<compile_context>
chip_gen: v6e
topology: v6e:2x2x1
jax: 0.10.0
libtpu: 0.0.40
codegen_flags: <defaults>
</compile_context>

<pallas_src>
import functools

import jax
import jax.numpy as jnp
from jax.experimental import pallas as pl
from jax.experimental.pallas import tpu as pltpu


_OUT_PAD = 128  # lane-dense output width (one full vreg lane row)


# ----------------------------------------------------------------------------
# Static helpers (shapes / layouts — plain Python ints).
# ----------------------------------------------------------------------------
def _num_valid_taps(kernel_size, dilation, seq_len):
    """Taps whose receptive offset lies inside the sequence.  The remaining
    (oldest) taps only ever see the causal zero padding, so they and their
    weight rows can be skipped statically."""
    return sum(1 for k in range(kernel_size)
               if (kernel_size - 1 - k) * dilation < seq_len)


def _max_causal_pad(kernel_size, num_layers, seq_len):
    m = 0
    for layer in range(num_layers):
        d = 2 ** layer
        n = _num_valid_taps(kernel_size, d, seq_len)
        m = max(m, (n - 1) * d)
    return m


def _pad8(n):
    return ((n + 7) // 8) * 8


def _slab_layouts(*, static_features_size, num_channels, kernel_size,
                  num_layers, output_size):
    """Static row layout of the two packed f32 weight slabs.

    slab0 (lane width = num_channels): all conv weights/biases + linear1.
    slab1 (lane width = 128): linear2 weight/bias zero-padded on the output
    lanes so the kernel's final store is a full-lane (lane-dense) store.
    """
    assert output_size <= _OUT_PAD
    cin0 = static_features_size + 2
    C = num_channels
    K = kernel_size

    layout0, off = {}, 0

    def add0(name, rows, cols):
        nonlocal off
        layout0[name] = (off, rows, cols)
        off += _pad8(rows)

    add0("w1_0", K * cin0, C)                 # block 0 conv1, (K*cin0, C)
    add0("wd", cin0, C)                       # block 0 1x1 downsample
    add0("bd", 1, C)
    for l in range(1, num_layers):
        add0(f"w1_{l}", K * C, C)             # conv1 of blocks 1..
    add0("b1", num_layers, C)
    for l in range(num_layers):
        add0(f"w2_{l}", K * C, C)             # conv2 of every block
    add0("b2", num_layers, C)
    add0("wl1", C, C // 2)                    # MLP head (hidden)
    add0("bl1", 1, C // 2)
    rows0 = off
    width0 = max(cols for _, _, cols in layout0.values())

    layout1, off = {}, 0

    def add1(name, rows, cols):
        nonlocal off
        layout1[name] = (off, rows, cols)
        off += _pad8(rows)

    add1("wl2", num_channels // 2, _OUT_PAD)  # lane-padded to 128
    add1("bl2", 1, _OUT_PAD)
    rows1 = off
    return layout0, rows0, width0, layout1, rows1, _OUT_PAD


def pack_params(params, *, static_features_size, num_channels, kernel_size,
                num_layers, output_size):
    """Pack the 11 weight/bias arrays into two pre-flattened f32 slabs
    (2 prologue DMAs instead of 11 tiny padded ones).  Run once, outside jit."""
    layout0, rows0, width0, layout1, rows1, out_pad = _slab_layouts(
        static_features_size=static_features_size, num_channels=num_channels,
        kernel_size=kernel_size, num_layers=num_layers,
        output_size=output_size)

    def put(slab, entry, w, cols=None):
        off, rows, full_cols = entry
        cols = full_cols if cols is None else cols
        return slab.at[off:off + rows, :cols].set(
            jnp.asarray(w, jnp.float32).reshape(rows, cols))

    slab0 = jnp.zeros((rows0, width0), jnp.float32)
    slab0 = put(slab0, layout0["w1_0"], params["w1_0"])
    slab0 = put(slab0, layout0["wd"], params["wd"])
    slab0 = put(slab0, layout0["bd"], params["bd"])
    for l in range(1, num_layers):
        slab0 = put(slab0, layout0[f"w1_{l}"], params["w1_rest"][l - 1])
    slab0 = put(slab0, layout0["b1"], params["b1"])
    for l in range(num_layers):
        slab0 = put(slab0, layout0[f"w2_{l}"], params["w2"][l])
    slab0 = put(slab0, layout0["b2"], params["b2"])
    slab0 = put(slab0, layout0["wl1"], params["wl1"])
    slab0 = put(slab0, layout0["bl1"], params["bl1"])

    slab1 = jnp.zeros((rows1, out_pad), jnp.float32)
    slab1 = put(slab1, layout1["wl2"], params["wl2"], cols=output_size)
    slab1 = put(slab1, layout1["bl2"], params["bl2"], cols=output_size)
    return slab0, slab1


# ----------------------------------------------------------------------------
# Pallas kernel: whole forward pass on VMEM-resident tensors (tiny model).
# ----------------------------------------------------------------------------
def _tcn_kernel(static_ref, auto_ref, slab0_ref, slab1_ref, out_ref, hpad_ref,
                *, seq_len, kernel_size, num_layers, layout0, layout1,
                s_feat, cin0, channels, pad_off):
    f32 = jnp.float32
    B = static_ref.shape[0]
    L = seq_len
    C = channels
    K = kernel_size
    relu = lambda v: jnp.maximum(v, 0.0)

    def sec0(name):
        off, rows, cols = layout0[name]
        return slab0_ref[off:off + rows, :cols]

    def sec1(name):
        off, rows, cols = layout1[name]
        return slab1_ref[off:off + rows, :cols]

    # Causal zero padding lives at the head of the persistent scratch; the
    # activations are always written into the tail, so the head stays zero.
    if pad_off > 0:
        hpad_ref[:, :pad_off, :] = jnp.zeros((B, pad_off, C), f32)

    # Feature glue (fused): repeat static features over time and append the
    # autoregressive (wait_time, residual) pairs -> (B, L, cin0).
    static_rep = jnp.broadcast_to(static_ref[...].astype(f32)[:, None, :],
                                  (B, L, s_feat))
    seq3 = jnp.concatenate([static_rep, auto_ref[...].astype(f32)], axis=2)

    def dilated_conv(h3, w_off, b_row, *, dilation, cin):
        """Causal dilated Conv1d as n_taps accumulated matmuls.  Shifted taps
        are static sublane-offset slices of the zero-padded VMEM scratch (no
        per-conv zero concat, no lane-axis tap concat); taps that only see
        the causal zero padding are dropped statically."""
        n_taps = _num_valid_taps(K, dilation, L)
        if n_taps > 1:
            hpad_ref[:, pad_off:, :cin] = h3       # tail of the padded buffer
        acc = None
        for j in range(K - n_taps, K):             # j = K-1 is "current time"
            shift = (K - 1 - j) * dilation
            if shift == 0:
                tap = h3
            else:
                start = pad_off - shift
                tap = hpad_ref[:, start:start + L, :cin]
            wj = slab0_ref[w_off + j * cin:w_off + (j + 1) * cin, :C]
            y = jnp.dot(tap.reshape(B * L, cin), wj,
                        preferred_element_type=f32)
            acc = y if acc is None else acc + y
        return (acc + b_row).reshape(B, L, C)

    h3 = seq3
    skip_last = jnp.zeros((B, C), f32)        # skip-connection sum at t = L-1
    for layer in range(num_layers):
        dilation = 2 ** layer
        cin = cin0 if layer == 0 else C
        w1_name = "w1_0" if layer == 0 else f"w1_{layer}"
        a1 = relu(dilated_conv(h3, layout0[w1_name][0],
                               sec0("b1")[layer:layer + 1, :],
                               dilation=dilation, cin=cin))
        a2 = relu(dilated_conv(a1, layout0[f"w2_{layer}"][0],
                               sec0("b2")[layer:layer + 1, :],
                               dilation=dilation, cin=C))
        # use_skip_connections=True: TCN output is the sum over blocks of the
        # post-ReLU conv path; only the last time step feeds the head.
        skip_last = skip_last + a2[:, L - 1, :]
        if layer < num_layers - 1:            # last block output is unused
            if layer == 0:                    # 1x1 downsample (channel change)
                res3 = (jnp.dot(seq3.reshape(B * L, cin0), sec0("wd"),
                                preferred_element_type=f32)
                        + sec0("bd")).reshape(B, L, C)
            else:
                res3 = h3
            h3 = relu(a2 + res3)

    # dropout (eval mode) -> identity; MLP head.  Output lanes beyond
    # output_size are exactly zero (zero-padded head weights), so the store
    # is a full 128-lane, unmasked store.
    h1 = relu(jnp.dot(skip_last, sec0("wl1"),
                      preferred_element_type=f32) + sec0("bl1"))
    out = jnp.dot(h1, sec1("wl2"), preferred_element_type=f32) + sec1("bl2")
    out_ref[...] = out.astype(out_ref.dtype)


def autoregressive_tcn_forward(x, slab0, slab1, *, static_features_size,
                               seq_length, kernel_size, num_layers,
                               num_channels, output_size, batch_block=None):
    """JAX wrapper: split x (view ops, fused by jit) and run one fused Pallas
    kernel.  Single grid step for small batches; 2-way megacore split only
    when each TensorCore gets an MXU-filling M dimension."""
    batch = x.shape[0]
    s_feat = static_features_size
    cin0 = s_feat + 2

    static2 = x[:, :s_feat]
    auto3 = x[:, s_feat:].reshape(batch, seq_length, 2)

    if batch_block is None:
        half = batch // 2
        if batch % 2 == 0 and half % 8 == 0 and half * seq_length >= 256:
            batch_block = half            # 2-way megacore split pays off
        else:
            batch_block = batch           # overhead-bound: one grid step
    batch_block = max(1, min(batch_block, batch))
    # NOTE: a batch not divisible by batch_block makes the last block do
    # (masked, harmless) wasted work — pad the batch upstream if that matters.
    grid = (pl.cdiv(batch, batch_block),)

    layout0, rows0, width0, layout1, rows1, out_pad = _slab_layouts(
        static_features_size=s_feat, num_channels=num_channels,
        kernel_size=kernel_size, num_layers=num_layers,
        output_size=output_size)
    assert slab0.shape == (rows0, width0), (slab0.shape, (rows0, width0))
    assert slab1.shape == (rows1, out_pad), (slab1.shape, (rows1, out_pad))
    pad_off = _pad8(_max_causal_pad(kernel_size, num_layers, seq_length))

    kernel = functools.partial(
        _tcn_kernel, seq_len=seq_length, kernel_size=kernel_size,
        num_layers=num_layers, layout0=layout0, layout1=layout1,
        s_feat=s_feat, cin0=cin0, channels=num_channels, pad_off=pad_off)

    out = pl.pallas_call(
        kernel,
        out_shape=jax.ShapeDtypeStruct((batch, out_pad), jnp.float32),
        grid=grid,
        in_specs=[pl.BlockSpec((batch_block, s_feat), lambda i: (i, 0)),
                  pl.BlockSpec((batch_block, seq_length, 2),
                               lambda i: (i, 0, 0)),
                  pl.BlockSpec(memory_space=pltpu.MemorySpace.VMEM),
                  pl.BlockSpec(memory_space=pltpu.MemorySpace.VMEM)],
        out_specs=pl.BlockSpec((batch_block, out_pad), lambda i: (i, 0)),
        scratch_shapes=[pltpu.VMEM(
            (batch_block, pad_off + seq_length, num_channels), jnp.float32)],
        compiler_params=pltpu.CompilerParams(
            dimension_semantics=("parallel",)),
    )(static2, auto3, slab0, slab1)
    return out[:, :output_size]


# ----------------------------------------------------------------------------
# Deterministic synthetic parameter init (shapes follow the module __init__).
# ----------------------------------------------------------------------------
def init_params(key, *, static_features_size, num_channels, kernel_size,
                output_size, num_layers):
    cin0 = static_features_size + 2
    c = num_channels
    k = kernel_size
    keys = jax.random.split(key, 11)

    def rn(kk, shape, fan_in):
        return (jax.random.normal(kk, shape, jnp.float32)
                / jnp.sqrt(jnp.float32(fan_in)))

    return dict(
        # Conv weights pre-flattened to (K*Cin, Cout); row block j is tap j
        # (j = K-1 is the "current time" tap).  From a PyTorch Conv1d weight W
        # of shape (Cout, Cin, K) (weight_norm folded) this equals
        #   W.permute(2, 1, 0).reshape(K * Cin, Cout).
        w1_0=rn(keys[0], (k * cin0, c), cin0 * k),        # block0 conv1
        wd=rn(keys[1], (cin0, c), cin0),                  # block0 1x1 downsample
        bd=rn(keys[2], (1, c), c),
        w1_rest=rn(keys[3], (max(num_layers - 1, 1), k * c, c), c * k),
        b1=rn(keys[4], (num_layers, c), c),
        w2=rn(keys[5], (num_layers, k * c, c), c * k),    # conv2 of each block
        b2=rn(keys[6], (num_layers, c), c),
        wl1=rn(keys[7], (c, c // 2), c),                  # linear1
        bl1=rn(keys[8], (1, c // 2), c),
        wl2=rn(keys[9], (c // 2, output_size), c // 2),   # linear2
        bl2=rn(keys[10], (1, output_size), c // 2),
    )


# ----------------------------------------------------------------------------
# Independent pure-JAX reference (NCL layout, lax.conv_general_dilated, full K
# taps, no slabs / no tap dropping) mirroring the PyTorch module in eval mode.
# ----------------------------------------------------------------------------
def _reference_forward(x, params, *, static_features_size, seq_length,
                       kernel_size, num_layers):
    f32 = jnp.float32
    B = x.shape[0]
    s = static_features_size
    K = kernel_size
    C = params["wl1"].shape[0]
    cin0 = s + 2
    relu = lambda v: jnp.maximum(v, 0.0)

    static = x[:, :s]
    auto = x[:, s:].reshape(B, seq_length, 2)
    static_rep = jnp.repeat(static[:, None, :], seq_length, axis=1)
    seq = jnp.concatenate([static_rep, auto], axis=2)
    h = jnp.transpose(seq, (0, 2, 1)).astype(f32)          # (B, Cin, L)

    def causal_conv(u, w_flat, b, dilation, cin):
        w = jnp.transpose(w_flat.reshape(K, cin, C), (2, 1, 0))  # (Cout,Cin,K)
        pad = (K - 1) * dilation
        y = jax.lax.conv_general_dilated(
            u, w, window_strides=(1,), padding=[(pad, 0)],
            rhs_dilation=(dilation,),
            dimension_numbers=("NCH", "OIH", "NCH"))
        return y + b[None, :, None]

    skip = jnp.zeros((B, C, seq_length), f32)
    for layer in range(num_layers):
        d = 2 ** layer
        cin = cin0 if layer == 0 else C
        w1 = params["w1_0"] if layer == 0 else params["w1_rest"][layer - 1]
        a1 = relu(causal_conv(h, w1, params["b1"][layer], d, cin))
        a2 = relu(causal_conv(a1, params["w2"][layer],
                              params["b2"][layer], d, C))
        skip = skip + a2
        if layer == 0:
            res = (jnp.einsum("bcl,cd->bdl", h, params["wd"])
                   + params["bd"][0][None, :, None])
        else:
            res = h
        h = relu(a2 + res)
    last = skip[:, :, -1]                                   # t = L-1
    h1 = relu(last @ params["wl1"] + params["bl1"])
    return h1 @ params["wl2"] + params["bl2"]


if __name__ == "__main__":
    static_features_size = 6
    seq_length = 8
    output_size = 1
    num_channels = 32
    kernel_size = 3
    num_layers = 4
    batch = 2
    total_input_size = static_features_size + 2 * seq_length   # 22

    key = jax.random.PRNGKey(0)
    k_x, k_p = jax.random.split(key)
    x = jax.random.normal(k_x, (batch, total_input_size), jnp.float32)
    params = init_params(k_p, static_features_size=static_features_size,
                         num_channels=num_channels, kernel_size=kernel_size,
                         output_size=output_size, num_layers=num_layers)
    slab0, slab1 = pack_params(
        params, static_features_size=static_features_size,
        num_channels=num_channels, kernel_size=kernel_size,
        num_layers=num_layers, output_size=output_size)

    fwd = jax.jit(functools.partial(
        autoregressive_tcn_forward,
        static_features_size=static_features_size, seq_length=seq_length,
        kernel_size=kernel_size, num_layers=num_layers,
        num_channels=num_channels, output_size=output_size))
    out = jax.block_until_ready(fwd(x, slab0, slab1))

    ref = _reference_forward(x, params,
                             static_features_size=static_features_size,
                             seq_length=seq_length, kernel_size=kernel_size,
                             num_layers=num_layers)

    assert out.shape == (batch, output_size), out.shape
    assert jnp.allclose(out, ref, atol=1e-3, rtol=1e-3), (out, ref)
    print("KERNEL_OK")
</pallas_src>

<mosaic_0001>
module attributes {stable_mosaic.version = 11 : i64} {
  func.func @_tcn_kernel(%arg0: i32, %arg1: memref<2x6xf32, #tpu.memory_space<vmem>>, %arg2: memref<2x8x2xf32, #tpu.memory_space<vmem>>, %arg3: memref<768x32xf32, #tpu.memory_space<vmem>>, %arg4: memref<24x128xf32, #tpu.memory_space<vmem>>, %arg5: memref<2x128xf32, #tpu.memory_space<vmem>>, %arg6: memref<2x16x32xf32, #tpu.memory_space<vmem>>) attributes {dimension_semantics = [#tpu.dimension_semantics<parallel>], iteration_bounds = array<i64: 1>, scalar_prefetch = 0 : i64, scratch_operands = 1 : i64, tpu.core_type = #tpu.core_type<tc>, window_params = [{transform_indices = @transform_0, window_bounds = array<i64: 2, 6>}, {transform_indices = @transform_1, window_bounds = array<i64: 2, 8, 2>}, {pipeline_mode = #tpu.pipeline_mode<synchronous>, transform_indices = @transform_2, window_bounds = array<i64: 768, 32>}, {pipeline_mode = #tpu.pipeline_mode<synchronous>, transform_indices = @transform_3, window_bounds = array<i64: 24, 128>}, {transform_indices = @transform_4, window_bounds = array<i64: 2, 128>}]} {
    %cst = arith.constant 0.000000e+00 : f32
    %0 = vector.broadcast %cst : f32 to vector<2x8x32xf32>
    %c0 = arith.constant 0 : index
    %c0_0 = arith.constant 0 : index
    %c0_1 = arith.constant 0 : index
    %1 = vector.load %arg6[%c0, %c0_0, %c0_1] : memref<2x16x32xf32, #tpu.memory_space<vmem>>, vector<2x8x32xf32>
    tpu.vector_store %arg6[%c0, %c0_0, %c0_1], %0 {strides = array<i32>} : memref<2x16x32xf32, #tpu.memory_space<vmem>>, vector<2x8x32xf32>,
    %c0_2 = arith.constant 0 : index
    %c0_3 = arith.constant 0 : index
    %2 = vector.load %arg1[%c0_2, %c0_3] : memref<2x6xf32, #tpu.memory_space<vmem>>, vector<2x6xf32>
    %3 = vector.shape_cast %2 : vector<2x6xf32> to vector<2x1x6xf32>
    %4 = vector.shape_cast %3 : vector<2x1x6xf32> to vector<2x1x6xf32>
    %5 = vector.broadcast %4 : vector<2x1x6xf32> to vector<2x8x6xf32>
    %c0_4 = arith.constant 0 : index
    %c0_5 = arith.constant 0 : index
    %c0_6 = arith.constant 0 : index
    %6 = vector.load %arg2[%c0_4, %c0_5, %c0_6] : memref<2x8x2xf32, #tpu.memory_space<vmem>>, vector<2x8x2xf32>
    %7 = tpu.concatenate %5, %6 in 2 : vector<2x8x6xf32>, vector<2x8x2xf32> -> vector<2x8x8xf32>
    %cst_7 = arith.constant 0.000000e+00 : f32
    %8 = vector.broadcast %cst_7 : f32 to vector<2x32xf32>
    %c328 = arith.constant 328 : index
    %c0_8 = arith.constant 0 : index
    %9 = vector.load %arg3[%c328, %c0_8] : memref<768x32xf32, #tpu.memory_space<vmem>>, vector<4x32xf32>
    %10 = vector.extract_strided_slice %9 {offsets = [0, 0], sizes = [1, 32], strides = [1, 1]} : vector<4x32xf32> to vector<1x32xf32>
    %c0_9 = arith.constant 0 : index
    %c8 = arith.constant 8 : index
    %c0_10 = arith.constant 0 : index
    %11 = vector.load %arg6[%c0_9, %c8, %c0_10] : memref<2x16x32xf32, #tpu.memory_space<vmem>>, vector<2x8x8xf32>
    tpu.vector_store %arg6[%c0_9, %c8, %c0_10], %7 {strides = array<i32>} : memref<2x16x32xf32, #tpu.memory_space<vmem>>, vector<2x8x8xf32>,
    %c0_11 = arith.constant 0 : index
    %c6 = arith.constant 6 : index
    %c0_12 = arith.constant 0 : index
    %12 = vector.load %arg6[%c0_11, %c6, %c0_12] : memref<2x16x32xf32, #tpu.memory_space<vmem>>, vector<2x8x8xf32>
    %c0_13 = arith.constant 0 : index
    %c0_14 = arith.constant 0 : index
    %13 = vector.load %arg3[%c0_13, %c0_14] : memref<768x32xf32, #tpu.memory_space<vmem>>, vector<8x32xf32>
    %14 = vector.shape_cast %12 : vector<2x8x8xf32> to vector<16x8xf32>
    %cst_15 = arith.constant dense<0.000000e+00> : vector<16x32xf32>
    %15 = tpu.matmul %14, %13, %cst_15 {dimension_numbers = #tpu.dot_dimension_numbers<[1], [0], [0], [1], [0, 0, 1, 1], [], []>} : vector<16x8xf32>, vector<8x32xf32>, vector<16x32xf32> -> vector<16x32xf32>
    %c0_16 = arith.constant 0 : index
    %c7 = arith.constant 7 : index
    %c0_17 = arith.constant 0 : index
    %16 = vector.load %arg6[%c0_16, %c7, %c0_17] : memref<2x16x32xf32, #tpu.memory_space<vmem>>, vector<2x8x8xf32>
    %c8_18 = arith.constant 8 : index
    %c0_19 = arith.constant 0 : index
    %17 = vector.load %arg3[%c8_18, %c0_19] : memref<768x32xf32, #tpu.memory_space<vmem>>, vector<8x32xf32>
    %18 = vector.shape_cast %16 : vector<2x8x8xf32> to vector<16x8xf32>
    %cst_20 = arith.constant dense<0.000000e+00> : vector<16x32xf32>
    %19 = tpu.matmul %18, %17, %cst_20 {dimension_numbers = #tpu.dot_dimension_numbers<[1], [0], [0], [1], [0, 0, 1, 1], [], []>} : vector<16x8xf32>, vector<8x32xf32>, vector<16x32xf32> -> vector<16x32xf32>
    %20 = arith.addf %15, %19 : vector<16x32xf32>
    %c16 = arith.constant 16 : index
    %c0_21 = arith.constant 0 : index
    %21 = vector.load %arg3[%c16, %c0_21] : memref<768x32xf32, #tpu.memory_space<vmem>>, vector<8x32xf32>
    %22 = vector.shape_cast %7 : vector<2x8x8xf32> to vector<16x8xf32>
    %cst_22 = arith.constant dense<0.000000e+00> : vector<16x32xf32>
    %23 = tpu.matmul %22, %21, %cst_22 {dimension_numbers = #tpu.dot_dimension_numbers<[1], [0], [0], [1], [0, 0, 1, 1], [], []>} : vector<16x8xf32>, vector<8x32xf32>, vector<16x32xf32> -> vector<16x32xf32>
    %24 = arith.addf %20, %23 : vector<16x32xf32>
    %25 = vector.broadcast %10 : vector<1x32xf32> to vector<16x32xf32>
    %26 = arith.addf %24, %25 : vector<16x32xf32>
    %27 = vector.shape_cast %26 : vector<16x32xf32> to vector<2x8x32xf32>
    %cst_23 = arith.constant 0.000000e+00 : f32
    %28 = vector.broadcast %cst_23 : f32 to vector<2x8x32xf32>
    %29 = arith.maximumf %27, %28 : vector<2x8x32xf32>
    %c720 = arith.constant 720 : index
    %c0_24 = arith.constant 0 : index
    %30 = vector.load %arg3[%c720, %c0_24] : memref<768x32xf32, #tpu.memory_space<vmem>>, vector<4x32xf32>
    %31 = vector.extract_strided_slice %30 {offsets = [0, 0], sizes = [1, 32], strides = [1, 1]} : vector<4x32xf32> to vector<1x32xf32>
    %c0_25 = arith.constant 0 : index
    %c8_26 = arith.constant 8 : index
    %c0_27 = arith.constant 0 : index
    %32 = vector.load %arg6[%c0_25, %c8_26, %c0_27] : memref<2x16x32xf32, #tpu.memory_space<vmem>>, vector<2x8x32xf32>
    tpu.vector_store %arg6[%c0_25, %c8_26, %c0_27], %29 {strides = array<i32>} : memref<2x16x32xf32, #tpu.memory_space<vmem>>, vector<2x8x32xf32>,
    %c0_28 = arith.constant 0 : index
    %c6_29 = arith.constant 6 : index
    %c0_30 = arith.constant 0 : index
    %33 = vector.load %arg6[%c0_28, %c6_29, %c0_30] : memref<2x16x32xf32, #tpu.memory_space<vmem>>, vector<2x8x32xf32>
    %c336 = arith.constant 336 : index
    %c0_31 = arith.constant 0 : index
    %34 = vector.load %arg3[%c336, %c0_31] : memref<768x32xf32, #tpu.memory_space<vmem>>, vector<32x32xf32>
    %35 = vector.shape_cast %33 : vector<2x8x32xf32> to vector<16x32xf32>
    %cst_32 = arith.constant dense<0.000000e+00> : vector<16x32xf32>
    %36 = tpu.matmul %35, %34, %cst_32 {dimension_numbers = #tpu.dot_dimension_numbers<[1], [0], [0], [1], [0, 0, 1, 1], [], []>} : vector<16x32xf32>, vector<32x32xf32>, vector<16x32xf32> -> vector<16x32xf32>
    %c0_33 = arith.constant 0 : index
    %c7_34 = arith.constant 7 : index
    %c0_35 = arith.constant 0 : index
    %37 = vector.load %arg6[%c0_33, %c7_34, %c0_35] : memref<2x16x32xf32, #tpu.memory_space<vmem>>, vector<2x8x32xf32>
    %c368 = arith.constant 368 : index
    %c0_36 = arith.constant 0 : index
    %38 = vector.load %arg3[%c368, %c0_36] : memref<768x32xf32, #tpu.memory_space<vmem>>, vector<32x32xf32>
    %39 = vector.shape_cast %37 : vector<2x8x32xf32> to vector<16x32xf32>
    %cst_37 = arith.constant dense<0.000000e+00> : vector<16x32xf32>
    %40 = tpu.matmul %39, %38, %cst_37 {dimension_numbers = #tpu.dot_dimension_numbers<[1], [0], [0], [1], [0, 0, 1, 1], [], []>} : vector<16x32xf32>, vector<32x32xf32>, vector<16x32xf32> -> vector<16x32xf32>
    %41 = arith.addf %36, %40 : vector<16x32xf32>
    %c400 = arith.constant 400 : index
    %c0_38 = arith.constant 0 : index
    %42 = vector.load %arg3[%c400, %c0_38] : memref<768x32xf32, #tpu.memory_space<vmem>>, vector<32x32xf32>
    %43 = vector.shape_cast %29 : vector<2x8x32xf32> to vector<16x32xf32>
    %cst_39 = arith.constant dense<0.000000e+00> : vector<16x32xf32>
    %44 = tpu.matmul %43, %42, %cst_39 {dimension_numbers = #tpu.dot_dimension_numbers<[1], [0], [0], [1], [0, 0, 1, 1], [], []>} : vector<16x32xf32>, vector<32x32xf32>, vector<16x32xf32> -> vector<16x32xf32>
    %45 = arith.addf %41, %44 : vector<16x32xf32>
    %46 = vector.broadcast %31 : vector<1x32xf32> to vector<16x32xf32>
    %47 = arith.addf %45, %46 : vector<16x32xf32>
    %48 = vector.shape_cast %47 : vector<16x32xf32> to vector<2x8x32xf32>
    %cst_40 = arith.constant 0.000000e+00 : f32
    %49 = vector.broadcast %cst_40 : f32 to vector<2x8x32xf32>
    %50 = arith.maximumf %48, %49 : vector<2x8x32xf32>
    %51 = vector.extract_strided_slice %50 {offsets = [0, 7, 0], sizes = [2, 1, 32], strides = [1, 1, 1]} : vector<2x8x32xf32> to vector<2x1x32xf32>
    %52 = vector.shape_cast %51 : vector<2x1x32xf32> to vector<2x32xf32>
    %53 = arith.addf %8, %52 : vector<2x32xf32>
    %54 = vector.shape_cast %7 : vector<2x8x8xf32> to vector<16x8xf32>
    %c24 = arith.constant 24 : index
    %c0_41 = arith.constant 0 : index
    %55 = vector.load %arg3[%c24, %c0_41] : memref<768x32xf32, #tpu.memory_space<vmem>>, vector<8x32xf32>
    %cst_42 = arith.constant dense<0.000000e+00> : vector<16x32xf32>
    %56 = tpu.matmul %54, %55, %cst_42 {dimension_numbers = #tpu.dot_dimension_numbers<[1], [0], [0], [1], [0, 0, 1, 1], [], []>} : vector<16x8xf32>, vector<8x32xf32>, vector<16x32xf32> -> vector<16x32xf32>
    %c32 = arith.constant 32 : index
    %c0_43 = arith.constant 0 : index
    %57 = vector.load %arg3[%c32, %c0_43] : memref<768x32xf32, #tpu.memory_space<vmem>>, vector<1x32xf32>
    %58 = vector.broadcast %57 : vector<1x32xf32> to vector<16x32xf32>
    %59 = arith.addf %56, %58 : vector<16x32xf32>
    %60 = vector.shape_cast %59 : vector<16x32xf32> to vector<2x8x32xf32>
    %61 = arith.addf %50, %60 : vector<2x8x32xf32>
    %cst_44 = arith.constant 0.000000e+00 : f32
    %62 = vector.broadcast %cst_44 : f32 to vector<2x8x32xf32>
    %63 = arith.maximumf %61, %62 : vector<2x8x32xf32>
    %c328_45 = arith.constant 328 : index
    %c0_46 = arith.constant 0 : index
    %64 = vector.load %arg3[%c328_45, %c0_46] : memref<768x32xf32, #tpu.memory_space<vmem>>, vector<4x32xf32>
    %65 = vector.extract_strided_slice %64 {offsets = [1, 0], sizes = [1, 32], strides = [1, 1]} : vector<4x32xf32> to vector<1x32xf32>
    %c0_47 = arith.constant 0 : index
    %c8_48 = arith.constant 8 : index
    %c0_49 = arith.constant 0 : index
    %66 = vector.load %arg6[%c0_47, %c8_48, %c0_49] : memref<2x16x32xf32, #tpu.memory_space<vmem>>, vector<2x8x32xf32>
    tpu.vector_store %arg6[%c0_47, %c8_48, %c0_49], %63 {strides = array<i32>} : memref<2x16x32xf32, #tpu.memory_space<vmem>>, vector<2x8x32xf32>,
    %c0_50 = arith.constant 0 : index
    %c4 = arith.constant 4 : index
    %c0_51 = arith.constant 0 : index
    %67 = vector.load %arg6[%c0_50, %c4, %c0_51] : memref<2x16x32xf32, #tpu.memory_space<vmem>>, vector<2x8x32xf32>
    %c40 = arith.constant 40 : index
    %c0_52 = arith.constant 0 : index
    %68 = vector.load %arg3[%c40, %c0_52] : memref<768x32xf32, #tpu.memory_space<vmem>>, vector<32x32xf32>
    %69 = vector.shape_cast %67 : vector<2x8x32xf32> to vector<16x32xf32>
    %cst_53 = arith.constant dense<0.000000e+00> : vector<16x32xf32>
    %70 = tpu.matmul %69, %68, %cst_53 {dimension_numbers = #tpu.dot_dimension_numbers<[1], [0], [0], [1], [0, 0, 1, 1], [], []>} : vector<16x32xf32>, vector<32x32xf32>, vector<16x32xf32> -> vector<16x32xf32>
    %c0_54 = arith.constant 0 : index
    %c6_55 = arith.constant 6 : index
    %c0_56 = arith.constant 0 : index
    %71 = vector.load %arg6[%c0_54, %c6_55, %c0_56] : memref<2x16x32xf32, #tpu.memory_space<vmem>>, vector<2x8x32xf32>
    %c72 = arith.constant 72 : index
    %c0_57 = arith.constant 0 : index
    %72 = vector.load %arg3[%c72, %c0_57] : memref<768x32xf32, #tpu.memory_space<vmem>>, vector<32x32xf32>
    %73 = vector.shape_cast %71 : vector<2x8x32xf32> to vector<16x32xf32>
    %cst_58 = arith.constant dense<0.000000e+00> : vector<16x32xf32>
    %74 = tpu.matmul %73, %72, %cst_58 {dimension_numbers = #tpu.dot_dimension_numbers<[1], [0], [0], [1], [0, 0, 1, 1], [], []>} : vector<16x32xf32>, vector<32x32xf32>, vector<16x32xf32> -> vector<16x32xf32>
    %75 = arith.addf %70, %74 : vector<16x32xf32>
    %c104 = arith.constant 104 : index
    %c0_59 = arith.constant 0 : index
    %76 = vector.load %arg3[%c104, %c0_59] : memref<768x32xf32, #tpu.memory_space<vmem>>, vector<32x32xf32>
    %77 = vector.shape_cast %63 : vector<2x8x32xf32> to vector<16x32xf32>
    %cst_60 = arith.constant dense<0.000000e+00> : vector<16x32xf32>
    %78 = tpu.matmul %77, %76, %cst_60 {dimension_numbers = #tpu.dot_dimension_numbers<[1], [0], [0], [1], [0, 0, 1, 1], [], []>} : vector<16x32xf32>, vector<32x32xf32>, vector<16x32xf32> -> vector<16x32xf32>
    %79 = arith.addf %75, %78 : vector<16x32xf32>
    %80 = vector.broadcast %65 : vector<1x32xf32> to vector<16x32xf32>
    %81 = arith.addf %79, %80 : vector<16x32xf32>
    %82 = vector.shape_cast %81 : vector<16x32xf32> to vector<2x8x32xf32>
    %cst_61 = arith.constant 0.000000e+00 : f32
    %83 = vector.broadcast %cst_61 : f32 to vector<2x8x32xf32>
    %84 = arith.maximumf %82, %83 : vector<2x8x32xf32>
    %c720_62 = arith.constant 720 : index
    %c0_63 = arith.constant 0 : index
    %85 = vector.load %arg3[%c720_62, %c0_63] : memref<768x32xf32, #tpu.memory_space<vmem>>, vector<4x32xf32>
    %86 = vector.extract_strided_slice %85 {offsets = [1, 0], sizes = [1, 32], strides = [1, 1]} : vector<4x32xf32> to vector<1x32xf32>
    %c0_64 = arith.constant 0 : index
    %c8_65 = arith.constant 8 : index
    %c0_66 = arith.constant 0 : index
    %87 = vector.load %arg6[%c0_64, %c8_65, %c0_66] : memref<2x16x32xf32, #tpu.memory_space<vmem>>, vector<2x8x32xf32>
    tpu.vector_store %arg6[%c0_64, %c8_65, %c0_66], %84 {strides = array<i32>} : memref<2x16x32xf32, #tpu.memory_space<vmem>>, vector<2x8x32xf32>,
    %c0_67 = arith.constant 0 : index
    %c4_68 = arith.constant 4 : index
    %c0_69 = arith.constant 0 : index
    %88 = vector.load %arg6[%c0_67, %c4_68, %c0_69] : memref<2x16x32xf32, #tpu.memory_space<vmem>>, vector<2x8x32xf32>
    %c432 = arith.constant 432 : index
    %c0_70 = arith.constant 0 : index
    %89 = vector.load %arg3[%c432, %c0_70] : memref<768x32xf32, #tpu.memory_space<vmem>>, vector<32x32xf32>
    %90 = vector.shape_cast %88 : vector<2x8x32xf32> to vector<16x32xf32>
    %cst_71 = arith.constant dense<0.000000e+00> : vector<16x32xf32>
    %91 = tpu.matmul %90, %89, %cst_71 {dimension_numbers = #tpu.dot_dimension_numbers<[1], [0], [0], [1], [0, 0, 1, 1], [], []>} : vector<16x32xf32>, vector<32x32xf32>, vector<16x32xf32> -> vector<16x32xf32>
    %c0_72 = arith.constant 0 : index
    %c6_73 = arith.constant 6 : index
    %c0_74 = arith.constant 0 : index
    %92 = vector.load %arg6[%c0_72, %c6_73, %c0_74] : memref<2x16x32xf32, #tpu.memory_space<vmem>>, vector<2x8x32xf32>
    %c464 = arith.constant 464 : index
    %c0_75 = arith.constant 0 : index
    %93 = vector.load %arg3[%c464, %c0_75] : memref<768x32xf32, #tpu.memory_space<vmem>>, vector<32x32xf32>
    %94 = vector.shape_cast %92 : vector<2x8x32xf32> to vector<16x32xf32>
    %cst_76 = arith.constant dense<0.000000e+00> : vector<16x32xf32>
    %95 = tpu.matmul %94, %93, %cst_76 {dimension_numbers = #tpu.dot_dimension_numbers<[1], [0], [0], [1], [0, 0, 1, 1], [], []>} : vector<16x32xf32>, vector<32x32xf32>, vector<16x32xf32> -> vector<16x32xf32>
    %96 = arith.addf %91, %95 : vector<16x32xf32>
    %c496 = arith.constant 496 : index
    %c0_77 = arith.constant 0 : index
    %97 = vector.load %arg3[%c496, %c0_77] : memref<768x32xf32, #tpu.memory_space<vmem>>, vector<32x32xf32>
    %98 = vector.shape_cast %84 : vector<2x8x32xf32> to vector<16x32xf32>
    %cst_78 = arith.constant dense<0.000000e+00> : vector<16x32xf32>
    %99 = tpu.matmul %98, %97, %cst_78 {dimension_numbers = #tpu.dot_dimension_numbers<[1], [0], [0], [1], [0, 0, 1, 1], [], []>} : vector<16x32xf32>, vector<32x32xf32>, vector<16x32xf32> -> vector<16x32xf32>
    %100 = arith.addf %96, %99 : vector<16x32xf32>
    %101 = vector.broadcast %86 : vector<1x32xf32> to vector<16x32xf32>
    %102 = arith.addf %100, %101 : vector<16x32xf32>
    %103 = vector.shape_cast %102 : vector<16x32xf32> to vector<2x8x32xf32>
    %cst_79 = arith.constant 0.000000e+00 : f32
    %104 = vector.broadcast %cst_79 : f32 to vector<2x8x32xf32>
    %105 = arith.maximumf %103, %104 : vector<2x8x32xf32>
    %106 = vector.extract_strided_slice %105 {offsets = [0, 7, 0], sizes = [2, 1, 32], strides = [1, 1, 1]} : vector<2x8x32xf32> to vector<2x1x32xf32>
    %107 = vector.shape_cast %106 : vector<2x1x32xf32> to vector<2x32xf32>
    %108 = arith.addf %53, %107 : vector<2x32xf32>
    %109 = arith.addf %105, %63 : vector<2x8x32xf32>
    %cst_80 = arith.constant 0.000000e+00 : f32
    %110 = vector.broadcast %cst_80 : f32 to vector<2x8x32xf32>
    %111 = arith.maximumf %109, %110 : vector<2x8x32xf32>
    %c328_81 = arith.constant 328 : index
    %c0_82 = arith.constant 0 : index
    %112 = vector.load %arg3[%c328_81, %c0_82] : memref<768x32xf32, #tpu.memory_space<vmem>>, vector<4x32xf32>
    %113 = vector.extract_strided_slice %112 {offsets = [2, 0], sizes = [1, 32], strides = [1, 1]} : vector<4x32xf32> to vector<1x32xf32>
    %c0_83 = arith.constant 0 : index
    %c8_84 = arith.constant 8 : index
    %c0_85 = arith.constant 0 : index
    %114 = vector.load %arg6[%c0_83, %c8_84, %c0_85] : memref<2x16x32xf32, #tpu.memory_space<vmem>>, vector<2x8x32xf32>
    tpu.vector_store %arg6[%c0_83, %c8_84, %c0_85], %111 {strides = array<i32>} : memref<2x16x32xf32, #tpu.memory_space<vmem>>, vector<2x8x32xf32>,
    %c0_86 = arith.constant 0 : index
    %c4_87 = arith.constant 4 : index
    %c0_88 = arith.constant 0 : index
    %115 = vector.load %arg6[%c0_86, %c4_87, %c0_88] : memref<2x16x32xf32, #tpu.memory_space<vmem>>, vector<2x8x32xf32>
    %c168 = arith.constant 168 : index
    %c0_89 = arith.constant 0 : index
    %116 = vector.load %arg3[%c168, %c0_89] : memref<768x32xf32, #tpu.memory_space<vmem>>, vector<32x32xf32>
    %117 = vector.shape_cast %115 : vector<2x8x32xf32> to vector<16x32xf32>
    %cst_90 = arith.constant dense<0.000000e+00> : vector<16x32xf32>
    %118 = tpu.matmul %117, %116, %cst_90 {dimension_numbers = #tpu.dot_dimension_numbers<[1], [0], [0], [1], [0, 0, 1, 1], [], []>} : vector<16x32xf32>, vector<32x32xf32>, vector<16x32xf32> -> vector<16x32xf32>
    %c200 = arith.constant 200 : index
    %c0_91 = arith.constant 0 : index
    %119 = vector.load %arg3[%c200, %c0_91] : memref<768x32xf32, #tpu.memory_space<vmem>>, vector<32x32xf32>
    %120 = vector.shape_cast %111 : vector<2x8x32xf32> to vector<16x32xf32>
    %cst_92 = arith.constant dense<0.000000e+00> : vector<16x32xf32>
    %121 = tpu.matmul %120, %119, %cst_92 {dimension_numbers = #tpu.dot_dimension_numbers<[1], [0], [0], [1], [0, 0, 1, 1], [], []>} : vector<16x32xf32>, vector<32x32xf32>, vector<16x32xf32> -> vector<16x32xf32>
    %122 = arith.addf %118, %121 : vector<16x32xf32>
    %123 = vector.broadcast %113 : vector<1x32xf32> to vector<16x32xf32>
    %124 = arith.addf %122, %123 : vector<16x32xf32>
    %125 = vector.shape_cast %124 : vector<16x32xf32> to vector<2x8x32xf32>
    %cst_93 = arith.constant 0.000000e+00 : f32
    %126 = vector.broadcast %cst_93 : f32 to vector<2x8x32xf32>
    %127 = arith.maximumf %125, %126 : vector<2x8x32xf32>
    %c720_94 = arith.constant 720 : index
    %c0_95 = arith.constant 0 : index
    %128 = vector.load %arg3[%c720_94, %c0_95] : memref<768x32xf32, #tpu.memory_space<vmem>>, vector<4x32xf32>
    %129 = vector.extract_strided_slice %128 {offsets = [2, 0], sizes = [1, 32], strides = [1, 1]} : vector<4x32xf32> to vector<1x32xf32>
    %c0_96 = arith.constant 0 : index
    %c8_97 = arith.constant 8 : index
    %c0_98 = arith.constant 0 : index
    %130 = vector.load %arg6[%c0_96, %c8_97, %c0_98] : memref<2x16x32xf32, #tpu.memory_space<vmem>>, vector<2x8x32xf32>
    tpu.vector_store %arg6[%c0_96, %c8_97, %c0_98], %127 {strides = array<i32>} : memref<2x16x32xf32, #tpu.memory_space<vmem>>, vector<2x8x32xf32>,
    %c0_99 = arith.constant 0 : index
    %c4_100 = arith.constant 4 : index
    %c0_101 = arith.constant 0 : index
    %131 = vector.load %arg6[%c0_99, %c4_100, %c0_101] : memref<2x16x32xf32, #tpu.memory_space<vmem>>, vector<2x8x32xf32>
    %c560 = arith.constant 560 : index
    %c0_102 = arith.constant 0 : index
    %132 = vector.load %arg3[%c560, %c0_102] : memref<768x32xf32, #tpu.memory_space<vmem>>, vector<32x32xf32>
    %133 = vector.shape_cast %131 : vector<2x8x32xf32> to vector<16x32xf32>
    %cst_103 = arith.constant dense<0.000000e+00> : vector<16x32xf32>
    %134 = tpu.matmul %133, %132, %cst_103 {dimension_numbers = #tpu.dot_dimension_numbers<[1], [0], [0], [1], [0, 0, 1, 1], [], []>} : vector<16x32xf32>, vector<32x32xf32>, vector<16x32xf32> -> vector<16x32xf32>
    %c592 = arith.constant 592 : index
    %c0_104 = arith.constant 0 : index
    %135 = vector.load %arg3[%c592, %c0_104] : memref<768x32xf32, #tpu.memory_space<vmem>>, vector<32x32xf32>
    %136 = vector.shape_cast %127 : vector<2x8x32xf32> to vector<16x32xf32>
    %cst_105 = arith.constant dense<0.000000e+00> : vector<16x32xf32>
    %137 = tpu.matmul %136, %135, %cst_105 {dimension_numbers = #tpu.dot_dimension_numbers<[1], [0], [0], [1], [0, 0, 1, 1], [], []>} : vector<16x32xf32>, vector<32x32xf32>, vector<16x32xf32> -> vector<16x32xf32>
    %138 = arith.addf %134, %137 : vector<16x32xf32>
    %139 = vector.broadcast %129 : vector<1x32xf32> to vector<16x32xf32>
    %140 = arith.addf %138, %139 : vector<16x32xf32>
    %141 = vector.shape_cast %140 : vector<16x32xf32> to vector<2x8x32xf32>
    %cst_106 = arith.constant 0.000000e+00 : f32
    %142 = vector.broadcast %cst_106 : f32 to vector<2x8x32xf32>
    %143 = arith.maximumf %141, %142 : vector<2x8x32xf32>
    %144 = vector.extract_strided_slice %143 {offsets = [0, 7, 0], sizes = [2, 1, 32], strides = [1, 1, 1]} : vector<2x8x32xf32> to vector<2x1x32xf32>
    %145 = vector.shape_cast %144 : vector<2x1x32xf32> to vector<2x32xf32>
    %146 = arith.addf %108, %145 : vector<2x32xf32>
    %147 = arith.addf %143, %111 : vector<2x8x32xf32>
    %cst_107 = arith.constant 0.000000e+00 : f32
    %148 = vector.broadcast %cst_107 : f32 to vector<2x8x32xf32>
    %149 = arith.maximumf %147, %148 : vector<2x8x32xf32>
    %c328_108 = arith.constant 328 : index
    %c0_109 = arith.constant 0 : index
    %150 = vector.load %arg3[%c328_108, %c0_109] : memref<768x32xf32, #tpu.memory_space<vmem>>, vector<4x32xf32>
    %151 = vector.extract_strided_slice %150 {offsets = [3, 0], sizes = [1, 32], strides = [1, 1]} : vector<4x32xf32> to vector<1x32xf32>
    %c296 = arith.constant 296 : index
    %c0_110 = arith.constant 0 : index
    %152 = vector.load %arg3[%c296, %c0_110] : memref<768x32xf32, #tpu.memory_space<vmem>>, vector<32x32xf32>
    %153 = vector.shape_cast %149 : vector<2x8x32xf32> to vector<16x32xf32>
    %cst_111 = arith.constant dense<0.000000e+00> : vector<16x32xf32>
    %154 = tpu.matmul %153, %152, %cst_111 {dimension_numbers = #tpu.dot_dimension_numbers<[1], [0], [0], [1], [0, 0, 1, 1], [], []>} : vector<16x32xf32>, vector<32x32xf32>, vector<16x32xf32> -> vector<16x32xf32>
    %155 = vector.broadcast %151 : vector<1x32xf32> to vector<16x32xf32>
    %156 = arith.addf %154, %155 : vector<16x32xf32>
    %157 = vector.shape_cast %156 : vector<16x32xf32> to vector<2x8x32xf32>
    %cst_112 = arith.constant 0.000000e+00 : f32
    %158 = vector.broadcast %cst_112 : f32 to vector<2x8x32xf32>
    %159 = arith.maximumf %157, %158 : vector<2x8x32xf32>
    %c720_113 = arith.constant 720 : index
    %c0_114 = arith.constant 0 : index
    %160 = vector.load %arg3[%c720_113, %c0_114] : memref<768x32xf32, #tpu.memory_space<vmem>>, vector<4x32xf32>
    %161 = vector.extract_strided_slice %160 {offsets = [3, 0], sizes = [1, 32], strides = [1, 1]} : vector<4x32xf32> to vector<1x32xf32>
    %c688 = arith.constant 688 : index
    %c0_115 = arith.constant 0 : index
    %162 = vector.load %arg3[%c688, %c0_115] : memref<768x32xf32, #tpu.memory_space<vmem>>, vector<32x32xf32>
    %163 = vector.shape_cast %159 : vector<2x8x32xf32> to vector<16x32xf32>
    %cst_116 = arith.constant dense<0.000000e+00> : vector<16x32xf32>
    %164 = tpu.matmul %163, %162, %cst_116 {dimension_numbers = #tpu.dot_dimension_numbers<[1], [0], [0], [1], [0, 0, 1, 1], [], []>} : vector<16x32xf32>, vector<32x32xf32>, vector<16x32xf32> -> vector<16x32xf32>
    %165 = vector.broadcast %161 : vector<1x32xf32> to vector<16x32xf32>
    %166 = arith.addf %164, %165 : vector<16x32xf32>
    %167 = vector.shape_cast %166 : vector<16x32xf32> to vector<2x8x32xf32>
    %cst_117 = arith.constant 0.000000e+00 : f32
    %168 = vector.broadcast %cst_117 : f32 to vector<2x8x32xf32>
    %169 = arith.maximumf %167, %168 : vector<2x8x32xf32>
    %170 = vector.extract_strided_slice %169 {offsets = [0, 7, 0], sizes = [2, 1, 32], strides = [1, 1, 1]} : vector<2x8x32xf32> to vector<2x1x32xf32>
    %171 = vector.shape_cast %170 : vector<2x1x32xf32> to vector<2x32xf32>
    %172 = arith.addf %146, %171 : vector<2x32xf32>
    %c728 = arith.constant 728 : index
    %c0_118 = arith.constant 0 : index
    %173 = vector.load %arg3[%c728, %c0_118] : memref<768x32xf32, #tpu.memory_space<vmem>>, vector<32x16xf32>
    %cst_119 = arith.constant dense<0.000000e+00> : vector<2x16xf32>
    %174 = tpu.matmul %172, %173, %cst_119 {dimension_numbers = #tpu.dot_dimension_numbers<[1], [0], [0], [1], [0, 0, 1, 1], [], []>} : vector<2x32xf32>, vector<32x16xf32>, vector<2x16xf32> -> vector<2x16xf32>
    %c760 = arith.constant 760 : index
    %c0_120 = arith.constant 0 : index
    %175 = vector.load %arg3[%c760, %c0_120] : memref<768x32xf32, #tpu.memory_space<vmem>>, vector<1x16xf32>
    %176 = vector.broadcast %175 : vector<1x16xf32> to vector<2x16xf32>
    %177 = arith.addf %174, %176 : vector<2x16xf32>
    %cst_121 = arith.constant 0.000000e+00 : f32
    %178 = vector.broadcast %cst_121 : f32 to vector<2x16xf32>
    %179 = arith.maximumf %177, %178 : vector<2x16xf32>
    %c0_122 = arith.constant 0 : index
    %c0_123 = arith.constant 0 : index
    %180 = vector.load %arg4[%c0_122, %c0_123] : memref<24x128xf32, #tpu.memory_space<vmem>>, vector<16x128xf32>
    %cst_124 = arith.constant dense<0.000000e+00> : vector<2x128xf32>
    %181 = tpu.matmul %179, %180, %cst_124 {dimension_numbers = #tpu.dot_dimension_numbers<[1], [0], [0], [1], [0, 0, 1, 1], [], []>} : vector<2x16xf32>, vector<16x128xf32>, vector<2x128xf32> -> vector<2x128xf32>
    %c16_125 = arith.constant 16 : index
    %c0_126 = arith.constant 0 : index
    %182 = vector.load %arg4[%c16_125, %c0_126] : memref<24x128xf32, #tpu.memory_space<vmem>>, vector<1x128xf32>
    %183 = vector.broadcast %182 : vector<1x128xf32> to vector<2x128xf32>
    %184 = arith.addf %181, %183 : vector<2x128xf32>
    %c0_127 = arith.constant 0 : index
    %c0_128 = arith.constant 0 : index
    %185 = vector.load %arg5[%c0_127, %c0_128] : memref<2x128xf32, #tpu.memory_space<vmem>>, vector<2x128xf32>
    tpu.vector_store %arg5[%c0_127, %c0_128], %184 {strides = array<i32>} : memref<2x128xf32, #tpu.memory_space<vmem>>, vector<2x128xf32>,
    return
  }
  func.func @transform_0(%arg0: i32) -> (i32, i32) {
    %c0_i32 = arith.constant 0 : i32
    %c0_i32_0 = arith.constant 0 : i32
    return %arg0, %c0_i32 : i32, i32
  }
  func.func @transform_1(%arg0: i32) -> (i32, i32, i32) {
    %c0_i32 = arith.constant 0 : i32
    %c0_i32_0 = arith.constant 0 : i32
    %c0_i32_1 = arith.constant 0 : i32
    return %arg0, %c0_i32, %c0_i32_0 : i32, i32, i32
  }
  func.func @transform_2(%arg0: i32) -> (i32, i32) {
    %c0_i32 = arith.constant 0 : i32
    %c0_i32_0 = arith.constant 0 : i32
    %c0_i32_1 = arith.constant 0 : i32
    return %c0_i32, %c0_i32_0 : i32, i32
  }
  func.func @transform_3(%arg0: i32) -> (i32, i32) {
    %c0_i32 = arith.constant 0 : i32
    %c0_i32_0 = arith.constant 0 : i32
    %c0_i32_1 = arith.constant 0 : i32
    return %c0_i32, %c0_i32_0 : i32, i32
  }
  func.func @transform_4(%arg0: i32) -> (i32, i32) {
    %c0_i32 = arith.constant 0 : i32
    %c0_i32_0 = arith.constant 0 : i32
    return %arg0, %c0_i32 : i32, i32
  }
}

</mosaic_0001>

<bundles_post_ra>
// kernel: autoregressive_tcn_forward.1
= control target key start
LH: loop header
LB: loop body
LE: loop exit
PB: predicated region body
PF: predicated region fallthrough
CT: control target
= control target key end

     0   :  { %s2333_s17 = smov 6   ;;  %vm17_vm0 = vcmask 261120   ;;  %v2334_v5 = vmov 0.0   ;;  %v2335_v6 = vmov 1966171168   ;;  %v33_v8 = vlaneseq  ;;  %s2755_s1 = inlined_call_operand.vmem [shape: f32[2,8,2], index: 1, kind: input, shape index: {}]   ;;  %s2756_s2 = inlined_call_operand.vmem [shape: f32[768,32], index: 2, kind: input, shape index: {}]   ;;  %s2757_s0 = inlined_call_operand.vmem [shape: f32[2,6], index: 0, kind: input, shape index: {}]   ;;  %s2758_s3 = inlined_call_operand.vmem [shape: f32[24,128], index: 3, kind: input, shape index: {}]   ;;  %s2759_s4 = inlined_call_operand.vmem [shape: f32[2,128], index: 4, kind: output, shape index: {}]  }
   0x1   :  { %v54_v0 = vld [vmem:[%s2755_s1] sm:$0xff]  ;;  %v76_v1 = vld [vmem:[%s2756_s2 + $0x8] sm:$0xff]  ;;  %v239_v3 = vld [vmem:[%s2756_s2 + $0x10] sm:$0xff]  ;;  %18 = vst.msk [vmem:[#allocation2] sm:$0xff] %vm17_vm0, %v2334_v5  ;;  %v31_v7 = vunpack.c.l.s4 %v2335_v6  ;;  %vm64_vm1 = vcmask 48128   ;;  %vm68_vm2 = vcmask 64512  }
   0x2   :  { %58 = vrot.lane.b32.xlu0 %v54_v0, %s2333_s17  ;;  %v73_v2 = vld [vmem:[%s2756_s2] sm:$0xff]  ;;  %v55_v4 = vld [vmem:[%s2755_s1 + $0x8] sm:$0xff]  ;;  %19 = vst.msk [vmem:[#allocation2 + $0x10] sm:$0xff] %vm17_vm0, %v2334_v5  ;;  %2126 = vmatprep.subr.mxu0 %v76_v1  ;;  %v2381_v10 = vshrl.u32 %v33_v8, 7  ;;  %v343_v31 = vld [vmem:[%s2756_s2 + $0x178] sm:$0xff]  ;;  %vm2336_vm3 = vmmov 0  }
   0x3   :  { %2131 = vmatprep.subr.mxu1 %v73_v2  ;;  %2127 = vmatpush3.msra.mxu0 %v76_v1  ;;  %v32_v9 = vunpack.c.0.s8 %v31_v7  ;;  %v1972_v12 = vld.sshfl [vmem:[%s2757_s0] sm:$0x11 pattern:$0x75316420]  ;;  %v345_v27 = vld [vmem:[%s2756_s2 + $0x188] sm:$0xff]  ;;  %v337_v32 = vld [vmem:[%s2756_s2 + $0x158] sm:$0xff] }
   0x4   :  { %2132 = vmatpush3.msra.mxu1 %v73_v2  ;;  %2136 = vmatprep.subr.mxu0 %v239_v3  ;;  %v2388_v13 = vsub.s32 0, %v2381_v10  ;;  %v29_v15 = vcombine.high %v1972_v12, %v1972_v12  ;;  %v339_v28 = vld [vmem:[%s2756_s2 + $0x168] sm:$0xff]  ;;  %v344_v29 = vld [vmem:[%s2756_s2 + $0x180] sm:$0xff]  ;;  %v342_v33 = vld [vmem:[%s2756_s2 + $0x170] sm:$0xff]  ;;  %vm1811_vm4 = vcmask 1041409   ;;  %vm1893_vm5 = vcmask 130048  }
   0x5   :  { %v35_v11 = vsub.s32 %v32_v9, %v2381_v10  ;;  %2141 = vmatprep.subr.mxu1 %v345_v27  ;;  %v338_v30 = vld [vmem:[%s2756_s2 + $0x160] sm:$0xff]  ;;  %v336_v34 = vld [vmem:[%s2756_s2 + $0x150] sm:$0xff]  ;;  %v511_v35 = vld [vmem:[%s2756_s2 + $0x1a8] sm:$0xff] }
   0x6   :  { %60 = vrot.lane.b32.xlu0 %v55_v4, %s2333_s17  ;;  %v605_v36 = vld [vmem:[%s2756_s2 + $0x18] sm:$0xff]  ;;  %v67_v39 = vld [vmem:[%s2756_s2 + $0x148] sm:$0xf]  ;;  %v510_v57 = vld [vmem:[%s2756_s2 + $0x1a0] sm:$0xff] }
   0x7   :  { %v36_v14 = vrot.slane %v1972_v12, %v35_v11  ;;  %v43_v17 = vrot.slane %v29_v15, %v35_v11  ;;  %v326_v43 = vrot.slane %v67_v39, %v2388_v13  ;;  %v509_v58 = vld [vmem:[%s2756_s2 + $0x198] sm:$0xff]  ;;  %v508_v59 = vld [vmem:[%s2756_s2 + $0x190] sm:$0xff]  ;;  %v704_v60 = vld [vmem:[%s2756_s2 + $0x60] sm:$0xff] }
   0x8   :  { %v698_v61 = vld [vmem:[%s2756_s2 + $0x40] sm:$0xff]  ;;  %v703_v62 = vld [vmem:[%s2756_s2 + $0x58] sm:$0xff]  ;;  %v702_v0 = vld [vmem:[%s2756_s2 + $0x50] sm:$0xff] }
   0x9   :  { %v47_v16 = vrot.slane %v36_v14, %v2388_v13  ;;  %v51_v20 = vrot.slane %v43_v17, %v2388_v13  ;;  %v697_v63 = vld [vmem:[%s2756_s2 + $0x38] sm:$0xff]  ;;  %v696_v1 = vld [vmem:[%s2756_s2 + $0x30] sm:$0xff]  ;;  %v701_v2 = vld [vmem:[%s2756_s2 + $0x48] sm:$0xff] }
   0xa   :  { %v870_v4 = vld [vmem:[%s2756_s2 + $0x80] sm:$0xff]  ;;  %v331_v9 = vld [vmem:[%s2756_s2 + $0x2d0] sm:$0xf]  ;;  %v976_v39 = vld [vmem:[%s2756_s2 + $0x1e8] sm:$0xff] }
   0xb   :  { %v598_v14 = vrot.slane %v331_v9, %v2388_v13  ;;  %v1252_v9 = vld [vmem:[%s2756_s2 + $0xe0] sm:$0xff] }
  0x74   :  { %v59_v18 = vpop.permute.xlu0 %58 }
  0x75   :  { %v2391_v19 = vsel %vm64_vm1, %v47_v16, %v59_v18 }
  0x76   :  { %69 = vst.msk [vmem:[#allocation2 + $0x8] sm:$0xff] %vm68_vm2, %v2391_v19 }
  0x78   :  { %v61_v21 = vpop.permute.xlu0 %60 }
  0x79   :  { %v2396_v22 = vsel %vm64_vm1, %v51_v20, %v61_v21 }
  0x7a   :  { %70 = vst.msk [vmem:[#allocation2 + $0x18] sm:$0xff] %vm68_vm2, %v2396_v22 }
  0x7d   :  { %v74_v23 = vld [vmem:[#allocation2 + $0x7] sm:$0xff] }
  0x7e   :  { %v71_v24 = vld [vmem:[#allocation2 + $0x6] sm:$0xff]  ;;  %2128 = vmatprep.mubr.msk.f32.mxu0 %vm68_vm2, %v74_v23 }
  0x7f   :  { %2133 = vmatprep.mubr.msk.f32.mxu1 %vm68_vm2, %v71_v24 }
  0x81   :  { %v75_v25 = vld [vmem:[#allocation2 + $0x17] sm:$0xff] }
  0x82   :  { %v72_v26 = vld [vmem:[#allocation2 + $0x16] sm:$0xff]  ;;  %2129 = vmatmul.mubr.msk.f32.vlgmr.msra.gmra.mxu0 %vm68_vm2, %v75_v25 }
  0x83   :  { %2134 = vmatmul.mubr.msk.f32.vlgmr.msra.gmra.mxu1 %vm68_vm2, %v72_v26  ;;  %2137 = vmatpush3.msra.mxu0 %v239_v3  ;;  %v695_v3 = vld [vmem:[%s2756_s2 + $0x28] sm:$0xff] }
  0x84   :  { %2138 = vmatprep.mubr.msk.f32.mxu0 %vm68_vm2, %v2391_v19  ;;  %2142 = vmatpush3.msra.mxu1 %v345_v27 }
  0x85   :  { %2152 = vmatprep.subr.mxu0 %v339_v28  ;;  %2143 = vmatprep.subr.mxu1 %v344_v29 }
  0x86   :  { %2139 = vmatmul.mubr.msk.f32.vlgmr.msra.gmra.mxu0 %vm68_vm2, %v2396_v22  ;;  %2144 = vmatpush3.msra.mxu1 %v344_v29 }
  0x87   :  { %2153 = vmatpush3.msra.mxu0 %v339_v28  ;;  %2145 = vmatprep.subr.mxu1 %v343_v31 }
  0x88   :  { %2154 = vmatprep.subr.mxu0 %v338_v30  ;;  %2146 = vmatpush3.msra.mxu1 %v343_v31 }
  0x89   :  { %2155 = vmatpush3.msra.mxu0 %v338_v30  ;;  %2147 = vmatprep.subr.mxu1 %v342_v33 }
  0x8a   :  { %2156 = vmatprep.subr.mxu0 %v337_v32  ;;  %2148 = vmatpush3.msra.mxu1 %v342_v33 }
  0x8b   :  { %2157 = vmatpush3.msra.mxu0 %v337_v32  ;;  %2163 = vmatprep.subr.mxu1 %v511_v35 }
  0x8c   :  { %2158 = vmatprep.subr.mxu0 %v336_v34 }
  0x8d   :  { %2159 = vmatpush3.msra.mxu0 %v336_v34 }
  0x8e   :  { %2174 = vmatprep.subr.mxu0 %v605_v36 }
 0x142   :  { %v2130_v37 = vpop.f32.mrf.mxu0 }
 0x143   :  { %v2135_v38 = vpop.f32.mrf.mxu1 }
 0x144   :  { %v149_v40 = vpop.f32.mrf.mxu0  ;;  %v236_v42 = vadd.f32 %v2135_v38, %v2130_v37  ;;  %v868_v37 = vld [vmem:[%s2756_s2 + $0x70] sm:$0xff]  ;;  %v867_v38 = vld [vmem:[%s2756_s2 + $0x68] sm:$0xff] }
 0x145   :  { %v230_v41 = vpop.f32.mrf.mxu1 }
 0x146   :  { %v2140_v44 = vpop.f32.mrf.mxu0  ;;  %v231_v45 = vadd.f32 %v230_v41, %v149_v40  ;;  %v970_v40 = vld [vmem:[%s2756_s2 + $0x1c8] sm:$0xff]  ;;  %v975_v41 = vld [vmem:[%s2756_s2 + $0x1e0] sm:$0xff] }
 0x147   :  { %v322_v46 = vadd.f32 %v2140_v44, %v236_v42  ;;  %v969_v42 = vld [vmem:[%s2756_s2 + $0x1c0] sm:$0xff]  ;;  %v968_v44 = vld [vmem:[%s2756_s2 + $0x1b8] sm:$0xff] }
 0x148   :  { %v312_v47 = vpop.f32.mrf.mxu0 }
 0x149   :  { %v328_v48 = vadd.f32 %v326_v43, %v322_v46  ;;  %v321_v49 = vadd.f32 %v312_v47, %v231_v45  ;;  %v973_v45 = vld [vmem:[%s2756_s2 + $0x1d0] sm:$0xff]  ;;  %v1142_v47 = vld [vmem:[%s2756_s2 + $0x208] sm:$0xff] }
 0x14a   :  { %v967_v46 = vld [vmem:[%s2756_s2 + $0x1b0] sm:$0xff] }
 0x14b   :  { %v330_v50 = vmax.f32 %v328_v48, 0.0  ;;  %v327_v51 = vadd.f32 %v326_v43, %v321_v49  ;;  %v974_v43 = vld [vmem:[%s2756_s2 + $0x1d8] sm:$0xff] }
 0x14d   :  { %333 = vst.msk [vmem:[#allocation2 + $0x18] sm:$0xff] %vm17_vm0, %v330_v50  ;;  %v329_v52 = vmax.f32 %v327_v51, 0.0  ;;  %v690_v51 = vld [vmem:[%s2756_s2 + $0x148] sm:$0xf] }
 0x14f   :  { %332 = vst.msk [vmem:[#allocation2 + $0x8] sm:$0xff] %vm17_vm0, %v329_v52 }
 0x154   :  { %v341_v55 = vld [vmem:[#allocation2 + $0x17] sm:$0xff] }
 0x155   :  { %v335_v56 = vld [vmem:[#allocation2 + $0x16] sm:$0xff] }
 0x156   :  { %v340_v53 = vld [vmem:[#allocation2 + $0x7] sm:$0xff] }
 0x157   :  { %v334_v54 = vld [vmem:[#allocation2 + $0x6] sm:$0xff]  ;;  %2149 = vmatprep.mubr.msk.f32.mxu1 %vm17_vm0, %v340_v53 }
 0x158   :  { %2160 = vmatprep.mubr.msk.f32.mxu0 %vm17_vm0, %v334_v54  ;;  %2150 = vmatmul.mubr.msk.f32.vlgmr.msra.gmra.mxu1 %vm17_vm0, %v341_v55 }
 0x159   :  { %2161 = vmatmul.mubr.msk.f32.vlgmr.msra.gmra.mxu0 %vm17_vm0, %v335_v56  ;;  %2164 = vmatpush3.msra.mxu1 %v511_v35 }
 0x15a   :  { %2171 = vmatprep.mubr.msk.f32.mxu1 %vm17_vm0, %v329_v52  ;;  %2165 = vmatprep.subr.mxu1 %v510_v57 }
 0x15b   :  { %2176 = vmatprep.mubr.msk.f32.mxu0 %vm68_vm2, %v2391_v19  ;;  %2166 = vmatpush3.msra.mxu1 %v510_v57  ;;  %v1985_v19 = vld [vmem:[%s2756_s2 + $0x20] ss:$0 sm:$0xff] }
 0x15c   :  { %2175 = vmatpush3.msra.mxu0 %v605_v36  ;;  %2167 = vmatprep.subr.mxu1 %v509_v58  ;;  %v869_v36 = vld [vmem:[%s2756_s2 + $0x78] sm:$0xff] }
 0x15d   :  { %2177 = vmatmul.mubr.msk.f32.vlgmr.msra.gmra.mxu0 %vm68_vm2, %v2396_v22  ;;  %2168 = vmatpush3.msra.mxu1 %v509_v58 }
 0x15e   :  { %2169 = vmatprep.subr.mxu1 %v508_v59  ;;  %2179 = vmatprep.subr.mxu0 %v704_v60 }
 0x15f   :  { %2170 = vmatpush3.msra.mxu1 %v508_v59  ;;  %2180 = vmatpush3.msra.mxu0 %v704_v60 }
 0x160   :  { %2172 = vmatmul.mubr.msk.f32.vlgmr.msra.gmra.mxu1 %vm17_vm0, %v330_v50  ;;  %2190 = vmatprep.subr.mxu1 %v698_v61  ;;  %v956_v50 = vsub.s32 1, %v2381_v10 }
 0x161   :  { %2181 = vmatprep.subr.mxu0 %v703_v62  ;;  %2191 = vmatpush3.msra.mxu1 %v698_v61 }
 0x162   :  { %2182 = vmatpush3.msra.mxu0 %v703_v62  ;;  %2192 = vmatprep.subr.mxu1 %v697_v63  ;;  %v957_v55 = vrot.slane %v690_v51, %v956_v50  ;;  %v1428_v51 = vld [vmem:[%s2756_s2 + $0x230] sm:$0xff] }
 0x163   :  { %2183 = vmatprep.subr.mxu0 %v702_v0  ;;  %2193 = vmatpush3.msra.mxu1 %v697_v63 }
 0x164   :  { %2184 = vmatpush3.msra.mxu0 %v702_v0  ;;  %2194 = vmatprep.subr.mxu1 %v696_v1 }
 0x165   :  { %2185 = vmatprep.subr.mxu0 %v701_v2  ;;  %2195 = vmatpush3.msra.mxu1 %v696_v1 }
 0x166   :  { %2186 = vmatpush3.msra.mxu0 %v701_v2  ;;  %2196 = vmatprep.subr.mxu1 %v695_v3 }
 0x167   :  { %2197 = vmatpush3.msra.mxu1 %v695_v3  ;;  %2201 = vmatprep.subr.mxu0 %v870_v4 }
 0x168   :  { %2212 = vmatprep.subr.mxu1 %v976_v39 }
 0x218   :  { %v2151_v7 = vpop.f32.mrf.mxu1 }
 0x219   :  { %v2162_v6 = vpop.f32.mrf.mxu0 }
 0x21a   :  { %v418_v11 = vpop.f32.mrf.mxu1  ;;  %v505_v12 = vadd.f32 %v2162_v6, %v2151_v7  ;;  %v1141_v6 = vld [vmem:[%s2756_s2 + $0x200] sm:$0xff]  ;;  %v1140_v7 = vld [vmem:[%s2756_s2 + $0x1f8] sm:$0xff] }
 0x21b   :  { %v499_v8 = vpop.f32.mrf.mxu0 }
 0x21c   :  { %v500_v17 = vadd.f32 %v499_v8, %v418_v11  ;;  %v1139_v8 = vld [vmem:[%s2756_s2 + $0x1f0] sm:$0xff]  ;;  %v1251_v11 = vld [vmem:[%s2756_s2 + $0xd8] sm:$0xff] }
 0x21d   :  { %v2178_v15 = vpop.f32.mrf.mxu0 }
 0x21e   :  { %v683_v24 = vadd.f32 %v2178_v15, %v1985_v19  ;;  %v1248_v15 = vld [vmem:[%s2756_s2 + $0xc0] sm:$0xff] }
 0x21f   :  { %v677_v23 = vpop.f32.mrf.mxu0 }
 0x220   :  { %v2173_v16 = vpop.f32.mrf.mxu1  ;;  %v678_v27 = vadd.f32 %v1985_v19, %v677_v23 }
 0x221   :  { %v594_v18 = vadd.f32 %v2173_v16, %v505_v12  ;;  %v1250_v12 = vld [vmem:[%s2756_s2 + $0xd0] sm:$0xff]  ;;  %v1247_v16 = vld [vmem:[%s2756_s2 + $0xb8] sm:$0xff] }
 0x222   :  { %v584_v20 = vpop.f32.mrf.mxu1 }
 0x223   :  { %v2497_v21 = vadd.f32 %v598_v14, %v594_v18  ;;  %v593_v22 = vadd.f32 %v584_v20, %v500_v17  ;;  %v1246_v17 = vld [vmem:[%s2756_s2 + $0xb0] sm:$0xff]  ;;  %v1245_v18 = vld [vmem:[%s2756_s2 + $0xa8] sm:$0xff] }
 0x225   :  { %v602_v25 = vmax.f32 %v2497_v21, 0.0  ;;  %v2500_v26 = vadd.f32 %v598_v14, %v593_v22  ;;  %v1249_v14 = vld [vmem:[%s2756_s2 + $0xc8] sm:$0xff]  ;;  %v962_v22 = vld [vmem:[%s2756_s2 + $0x2d0] sm:$0xf] }
 0x226   :  { %v1708_v21 = vld [vmem:[%s2756_s2 + $0x2c8] sm:$0xff] }
 0x227   :  { %v687_v13 = vadd.f32 %v683_v24, %v602_v25  ;;  %v601_v28 = vmax.f32 %v2500_v26, 0.0  ;;  %v1706_v26 = vld [vmem:[%s2756_s2 + $0x2b8] sm:$0xff] }
 0x229   :  { %v2505_v29 = vmax.f32 %v687_v13, 0.0  ;;  %v686_v30 = vadd.f32 %v678_v27, %v601_v28  ;;  %v1229_v13 = vrot.slane %v962_v22, %v956_v50  ;;  %v1429_v50 = vld [vmem:[%s2756_s2 + $0x238] sm:$0xff] }
 0x22b   :  { %692 = vst.msk [vmem:[#allocation2 + $0x18] sm:$0xff] %vm17_vm0, %v2505_v29  ;;  %v2511_v31 = vmax.f32 %v686_v30, 0.0 }
 0x22d   :  { %691 = vst.msk [vmem:[#allocation2 + $0x8] sm:$0xff] %vm17_vm0, %v2511_v31 }
 0x232   :  { %v700_v34 = vld [vmem:[#allocation2 + $0x16] sm:$0xff] }
 0x233   :  { %v694_v35 = vld [vmem:[#allocation2 + $0x14] sm:$0xff] }
 0x234   :  { %v699_v32 = vld [vmem:[#allocation2 + $0x6] sm:$0xff] }
 0x235   :  { %v693_v33 = vld [vmem:[#allocation2 + $0x4] sm:$0xff]  ;;  %2187 = vmatprep.mubr.msk.f32.mxu0 %vm17_vm0, %v699_v32 }
 0x236   :  { %2198 = vmatprep.mubr.msk.f32.mxu1 %vm17_vm0, %v693_v33  ;;  %2188 = vmatmul.mubr.msk.f32.vlgmr.msra.gmra.mxu0 %vm17_vm0, %v700_v34 }
 0x237   :  { %2199 = vmatmul.mubr.msk.f32.vlgmr.msra.gmra.mxu1 %vm17_vm0, %v694_v35  ;;  %2202 = vmatpush3.msra.mxu0 %v870_v4 }
 0x238   :  { %2209 = vmatprep.mubr.msk.f32.mxu0 %vm17_vm0, %v2511_v31  ;;  %2203 = vmatprep.subr.mxu0 %v869_v36 }
 0x239   :  { %2204 = vmatpush3.msra.mxu0 %v869_v36  ;;  %2213 = vmatpush3.msra.mxu1 %v976_v39 }
 0x23a   :  { %2205 = vmatprep.subr.mxu0 %v868_v37  ;;  %2214 = vmatprep.subr.mxu1 %v975_v41 }
 0x23b   :  { %2206 = vmatpush3.msra.mxu0 %v868_v37  ;;  %2215 = vmatpush3.msra.mxu1 %v975_v41 }
 0x23c   :  { %2207 = vmatprep.subr.mxu0 %v867_v38  ;;  %2216 = vmatprep.subr.mxu1 %v974_v43 }
 0x23d   :  { %2208 = vmatpush3.msra.mxu0 %v867_v38  ;;  %2217 = vmatpush3.msra.mxu1 %v974_v43 }
 0x23e   :  { %2210 = vmatmul.mubr.msk.f32.vlgmr.msra.gmra.mxu0 %vm17_vm0, %v2505_v29  ;;  %2223 = vmatprep.subr.mxu0 %v970_v40 }
 0x23f   :  { %2224 = vmatpush3.msra.mxu0 %v970_v40  ;;  %2218 = vmatprep.subr.mxu1 %v973_v45 }
 0x240   :  { %2225 = vmatprep.subr.mxu0 %v969_v42  ;;  %2219 = vmatpush3.msra.mxu1 %v973_v45  ;;  %v1434_v45 = vld [vmem:[%s2756_s2 + $0x260] sm:$0xff] }
 0x241   :  { %2226 = vmatpush3.msra.mxu0 %v969_v42  ;;  %2234 = vmatprep.subr.mxu1 %v1142_v47 }
 0x242   :  { %2227 = vmatprep.subr.mxu0 %v968_v44 }
 0x243   :  { %2228 = vmatpush3.msra.mxu0 %v968_v44 }
 0x244   :  { %2229 = vmatprep.subr.mxu0 %v967_v46 }
 0x245   :  { %2230 = vmatpush3.msra.mxu0 %v967_v46  ;;  %v1433_v46 = vld [vmem:[%s2756_s2 + $0x258] sm:$0xff] }
 0x246   :  { %2245 = vmatprep.subr.mxu0 %v1252_v9 }
 0x2f6   :  { %v2189_v48 = vpop.f32.mrf.mxu0 }
 0x2f7   :  { %v2200_v49 = vpop.f32.mrf.mxu1 }
 0x2f8   :  { %v777_v52 = vpop.f32.mrf.mxu0  ;;  %v864_v54 = vadd.f32 %v2200_v49, %v2189_v48  ;;  %v1431_v48 = vld [vmem:[%s2756_s2 + $0x248] sm:$0xff]  ;;  %v1430_v49 = vld [vmem:[%s2756_s2 + $0x240] sm:$0xff] }
 0x2f9   :  { %v858_v53 = vpop.f32.mrf.mxu1 }
 0x2fa   :  { %v859_v57 = vadd.f32 %v858_v53, %v777_v52  ;;  %v1417_v52 = vsub.s32 2, %v2381_v10  ;;  %v1240_v53 = vld [vmem:[%s2756_s2 + $0x148] sm:$0xf] }
 0x2fe   :  { %v2211_v56 = vpop.f32.mrf.mxu0 }
 0x2ff   :  { %v953_v58 = vadd.f32 %v2211_v56, %v864_v54 }
 0x300   :  { %v943_v59 = vpop.f32.mrf.mxu0 }
 0x301   :  { %v959_v60 = vadd.f32 %v957_v55, %v953_v58  ;;  %v952_v61 = vadd.f32 %v943_v59, %v859_v57 }
 0x303   :  { %v961_v62 = vmax.f32 %v959_v60, 0.0  ;;  %v958_v63 = vadd.f32 %v957_v55, %v952_v61  ;;  %v1418_v55 = vrot.slane %v1240_v53, %v1417_v52 }
 0x305   :  { %964 = vst.msk [vmem:[#allocation2 + $0x18] sm:$0xff] %vm17_vm0, %v961_v62  ;;  %v960_v0 = vmax.f32 %v958_v63, 0.0 }
 0x307   :  { %963 = vst.msk [vmem:[#allocation2 + $0x8] sm:$0xff] %vm17_vm0, %v960_v0 }
 0x30c   :  { %v972_v3 = vld [vmem:[#allocation2 + $0x16] sm:$0xff] }
 0x30d   :  { %v966_v4 = vld [vmem:[#allocation2 + $0x14] sm:$0xff] }
 0x30e   :  { %v971_v1 = vld [vmem:[#allocation2 + $0x6] sm:$0xff] }
 0x30f   :  { %v965_v2 = vld [vmem:[#allocation2 + $0x4] sm:$0xff]  ;;  %2220 = vmatprep.mubr.msk.f32.mxu1 %vm17_vm0, %v971_v1 }
 0x310   :  { %2231 = vmatprep.mubr.msk.f32.mxu0 %vm17_vm0, %v965_v2  ;;  %2221 = vmatmul.mubr.msk.f32.vlgmr.msra.gmra.mxu1 %vm17_vm0, %v972_v3  ;;  %v1616_v3 = vld [vmem:[%s2756_s2 + $0x140] sm:$0xff] }
 0x311   :  { %2232 = vmatmul.mubr.msk.f32.vlgmr.msra.gmra.mxu0 %vm17_vm0, %v966_v4  ;;  %2235 = vmatpush3.msra.mxu1 %v1142_v47  ;;  %v1432_v47 = vld [vmem:[%s2756_s2 + $0x250] sm:$0xff]  ;;  %v1615_v4 = vld [vmem:[%s2756_s2 + $0x138] sm:$0xff] }
 0x312   :  { %2242 = vmatprep.mubr.msk.f32.mxu1 %vm17_vm0, %v960_v0  ;;  %2236 = vmatprep.subr.mxu1 %v1141_v6 }
 0x313   :  { %2237 = vmatpush3.msra.mxu1 %v1141_v6  ;;  %2246 = vmatpush3.msra.mxu0 %v1252_v9  ;;  %v1614_v6 = vld [vmem:[%s2756_s2 + $0x130] sm:$0xff] }
 0x314   :  { %2238 = vmatprep.subr.mxu1 %v1140_v7  ;;  %2247 = vmatprep.subr.mxu0 %v1251_v11 }
 0x315   :  { %2239 = vmatpush3.msra.mxu1 %v1140_v7  ;;  %2248 = vmatpush3.msra.mxu0 %v1251_v11  ;;  %v1613_v7 = vld [vmem:[%s2756_s2 + $0x128] sm:$0xff] }
 0x316   :  { %2240 = vmatprep.subr.mxu1 %v1139_v8  ;;  %2249 = vmatprep.subr.mxu0 %v1250_v12 }
 0x317   :  { %2241 = vmatpush3.msra.mxu1 %v1139_v8  ;;  %2250 = vmatpush3.msra.mxu0 %v1250_v12  ;;  %v1423_v8 = vld [vmem:[%s2756_s2 + $0x2d0] sm:$0xf] }
 0x318   :  { %2243 = vmatmul.mubr.msk.f32.vlgmr.msra.gmra.mxu1 %vm17_vm0, %v961_v62  ;;  %2251 = vmatprep.subr.mxu0 %v1249_v14  ;;  %v1601_v11 = vrot.slane %v1423_v8, %v1417_v52 }
 0x319   :  { %2252 = vmatpush3.msra.mxu0 %v1249_v14  ;;  %2256 = vmatprep.subr.mxu1 %v1248_v15 }
 0x31a   :  { %2257 = vmatpush3.msra.mxu1 %v1248_v15 }
 0x31b   :  { %2258 = vmatprep.subr.mxu1 %v1247_v16 }
 0x31c   :  { %2259 = vmatpush3.msra.mxu1 %v1247_v16 }
 0x31d   :  { %2260 = vmatprep.subr.mxu1 %v1246_v17 }
 0x31e   :  { %2261 = vmatpush3.msra.mxu1 %v1246_v17 }
 0x31f   :  { %2262 = vmatprep.subr.mxu1 %v1245_v18 }
 0x320   :  { %2263 = vmatpush3.msra.mxu1 %v1245_v18 }
 0x321   :  { %2278 = vmatprep.subr.mxu1 %v1431_v48 }
 0x3d0   :  { %v2222_v19 = vpop.f32.mrf.mxu1 }
 0x3d1   :  { %v2233_v20 = vpop.f32.mrf.mxu0 }
 0x3d2   :  { %v1049_v23 = vpop.f32.mrf.mxu1  ;;  %v1136_v27 = vadd.f32 %v2233_v20, %v2222_v19 }
 0x3d3   :  { %v1130_v24 = vpop.f32.mrf.mxu0 }
 0x3d4   :  { %v1131_v32 = vadd.f32 %v1130_v24, %v1049_v23 }
 0x3d8   :  { %v2244_v30 = vpop.f32.mrf.mxu1 }
 0x3d9   :  { %v1225_v33 = vadd.f32 %v2244_v30, %v1136_v27 }
 0x3da   :  { %v1215_v34 = vpop.f32.mrf.mxu1 }
 0x3db   :  { %v2611_v35 = vadd.f32 %v1229_v13, %v1225_v33  ;;  %v1224_v36 = vadd.f32 %v1215_v34, %v1131_v32 }
 0x3dd   :  { %v1233_v37 = vmax.f32 %v2611_v35, 0.0  ;;  %v2614_v38 = vadd.f32 %v1229_v13, %v1224_v36  ;;  %v1619_v35 = vsub.s32 3, %v2381_v10  ;;  %v1612_v36 = vld [vmem:[%s2756_s2 + $0x148] sm:$0xf] }
 0x3de   :  { %v1800_v10 = vld [vmem:[%s2756_s2 + $0x2e8] sm:$0xff] }
 0x3df   :  { %v1237_v39 = vadd.f32 %v1233_v37, %v2505_v29  ;;  %v1232_v40 = vmax.f32 %v2614_v38, 0.0  ;;  %v1235_v19 = vadd.f32 %v1233_v37, %v602_v25  ;;  %v1707_v25 = vld [vmem:[%s2756_s2 + $0x2c0] sm:$0xff]  ;;  %v1620_v37 = vrot.slane %v1612_v36, %v1619_v35 }
 0x3e1   :  { %v2620_v41 = vmax.f32 %v1237_v39, 0.0  ;;  %v1236_v42 = vadd.f32 %v1232_v40, %v2511_v31  ;;  %v1435_v31 = vld [vmem:[%s2756_s2 + $0x268] sm:$0xff]  ;;  %v1234_v23 = vadd.f32 %v1232_v40, %v601_v28  ;;  %v1705_v28 = vld [vmem:[%s2756_s2 + $0x2b0] sm:$0xff] }
 0x3e2   :  { %2267 = vmatprep.subr.mxu0 %v1435_v31 }
 0x3e3   :  { %1242 = vst.msk [vmem:[#allocation2 + $0x18] sm:$0xff] %vm17_vm0, %v2620_v41  ;;  %v2627_v43 = vmax.f32 %v1236_v42, 0.0 }
 0x3e5   :  { %1241 = vst.msk [vmem:[#allocation2 + $0x8] sm:$0xff] %vm17_vm0, %v2627_v43  ;;  %2253 = vmatprep.mubr.msk.f32.mxu0 %vm17_vm0, %v2627_v43 }
 0x3e6   :  { %2254 = vmatmul.mubr.msk.f32.vlgmr.msra.gmra.mxu0 %vm17_vm0, %v2620_v41 }
 0x3e7   :  { %2268 = vmatpush3.msra.mxu0 %v1435_v31  ;;  %v1798_v31 = vld [vmem:[%s2756_s2 + $0x2d8] sm:$0xff] }
 0x3e8   :  { %2269 = vmatprep.subr.mxu0 %v1434_v45 }
 0x3e9   :  { %2270 = vmatpush3.msra.mxu0 %v1434_v45  ;;  %v1704_v45 = vld [vmem:[%s2756_s2 + $0x2d0] sm:$0xf] }
 0x3ea   :  { %v1244_v44 = vld [vmem:[#allocation2 + $0x14] sm:$0xff]  ;;  %2271 = vmatprep.subr.mxu0 %v1433_v46 }
 0x3eb   :  { %2272 = vmatpush3.msra.mxu0 %v1433_v46  ;;  %v1712_v46 = vrot.slane %v1704_v45, %v1619_v35 }
 0x3ec   :  { %v1243_v29 = vld [vmem:[#allocation2 + $0x4] sm:$0xff]  ;;  %2273 = vmatprep.subr.mxu0 %v1432_v47 }
 0x3ed   :  { %2264 = vmatprep.mubr.msk.f32.mxu1 %vm17_vm0, %v1243_v29  ;;  %2274 = vmatpush3.msra.mxu0 %v1432_v47  ;;  %v1801_v29 = vld [vmem:[%s2756_s2 + $0x2f0] sm:$0xff] }
 0x3ee   :  { %2265 = vmatmul.mubr.msk.f32.vlgmr.msra.gmra.mxu1 %vm17_vm0, %v1244_v44  ;;  %2289 = vmatprep.subr.mxu0 %v1616_v3  ;;  %v1799_v44 = vld [vmem:[%s2756_s2 + $0x2e0] sm:$0xff] }
 0x3ef   :  { %2279 = vmatpush3.msra.mxu1 %v1431_v48 }
 0x3f0   :  { %2280 = vmatprep.subr.mxu1 %v1430_v49 }
 0x3f1   :  { %2281 = vmatpush3.msra.mxu1 %v1430_v49 }
 0x3f2   :  { %2282 = vmatprep.subr.mxu1 %v1429_v50 }
 0x3f3   :  { %2283 = vmatpush3.msra.mxu1 %v1429_v50 }
 0x3f4   :  { %2284 = vmatprep.subr.mxu1 %v1428_v51 }
 0x3f5   :  { %2285 = vmatpush3.msra.mxu1 %v1428_v51 }
 0x3f6   :  { %2300 = vmatprep.subr.mxu1 %v1708_v21 }
 0x4a6   :  { %v2255_v54 = vpop.f32.mrf.mxu0 }
 0x4a8   :  { %v1325_v58 = vpop.f32.mrf.mxu0 }
 0x4ae   :  { %v2266_v56 = vpop.f32.mrf.mxu1 }
 0x4af   :  { %v1412_v57 = vadd.f32 %v2266_v56, %v2255_v54 }
 0x4b0   :  { %v1406_v59 = vpop.f32.mrf.mxu1 }
 0x4b1   :  { %v1420_v60 = vadd.f32 %v1418_v55, %v1412_v57  ;;  %v1407_v61 = vadd.f32 %v1406_v59, %v1325_v58  ;;  %v1887_v58 = vld [vmem:[%s2758_s3 + $0x8] sm:$0xff]  ;;  %v1886_v59 = vld [vmem:[%s2758_s3] sm:$0xff] }
 0x4b3   :  { %v1422_v62 = vmax.f32 %v1420_v60, 0.0  ;;  %v1419_v63 = vadd.f32 %v1418_v55, %v1407_v61  ;;  %v2012_v60 = vld [vmem:[%s2756_s2 + $0x2f8] ss:$0 sm:$0xff] }
 0x4b5   :  { %1425 = vst.msk [vmem:[#allocation2 + $0x18] sm:$0xff] %vm17_vm0, %v1422_v62  ;;  %v1421_v0 = vmax.f32 %v1419_v63, 0.0 }
 0x4b7   :  { %1424 = vst.msk [vmem:[#allocation2 + $0x8] sm:$0xff] %vm17_vm0, %v1421_v0  ;;  %2275 = vmatprep.mubr.msk.f32.mxu0 %vm17_vm0, %v1421_v0 }
 0x4b8   :  { %2276 = vmatmul.mubr.msk.f32.vlgmr.msra.gmra.mxu0 %vm17_vm0, %v1422_v62 }
 0x4b9   :  { %2290 = vmatpush3.msra.mxu0 %v1616_v3 }
 0x4ba   :  { %2291 = vmatprep.subr.mxu0 %v1615_v4 }
 0x4bb   :  { %2292 = vmatpush3.msra.mxu0 %v1615_v4 }
 0x4bc   :  { %v1427_v2 = vld [vmem:[#allocation2 + $0x14] sm:$0xff]  ;;  %2293 = vmatprep.subr.mxu0 %v1614_v6 }
 0x4bd   :  { %2294 = vmatpush3.msra.mxu0 %v1614_v6 }
 0x4be   :  { %v1426_v1 = vld [vmem:[#allocation2 + $0x4] sm:$0xff]  ;;  %2295 = vmatprep.subr.mxu0 %v1613_v7 }
 0x4bf   :  { %2286 = vmatprep.mubr.msk.f32.mxu1 %vm17_vm0, %v1426_v1  ;;  %2296 = vmatpush3.msra.mxu0 %v1613_v7  ;;  %v2014_v1 = vld [vmem:[%s2758_s3 + $0x10] ss:$0 sm:$0xff] }
 0x4c0   :  { %2287 = vmatmul.mubr.msk.f32.vlgmr.msra.gmra.mxu1 %vm17_vm0, %v1427_v2  ;;  %2311 = vmatprep.subr.mxu0 %v2334_v5 }
 0x4c1   :  { %2301 = vmatpush3.msra.mxu1 %v1708_v21 }
 0x4c2   :  { %2302 = vmatprep.subr.mxu1 %v1707_v25 }
 0x4c3   :  { %2303 = vmatpush3.msra.mxu1 %v1707_v25 }
 0x4c4   :  { %2304 = vmatprep.subr.mxu1 %v1706_v26 }
 0x4c5   :  { %2305 = vmatpush3.msra.mxu1 %v1706_v26 }
 0x4c6   :  { %2306 = vmatprep.subr.mxu1 %v1705_v28 }
 0x4c7   :  { %2307 = vmatpush3.msra.mxu1 %v1705_v28 }
 0x4c8   :  { %2322 = vmatprep.subr.mxu1 %v2334_v5 }
 0x578   :  { %v2277_v9 = vpop.f32.mrf.mxu0 }
 0x57a   :  { %v1508_v15 = vpop.f32.mrf.mxu0 }
 0x580   :  { %v2288_v12 = vpop.f32.mrf.mxu1 }
 0x581   :  { %v1595_v14 = vadd.f32 %v2288_v12, %v2277_v9 }
 0x582   :  { %v1589_v16 = vpop.f32.mrf.mxu1 }
 0x583   :  { %v1603_v17 = vadd.f32 %v1601_v11, %v1595_v14  ;;  %v1590_v18 = vadd.f32 %v1589_v16, %v1508_v15 }
 0x585   :  { %v1605_v20 = vmax.f32 %v1603_v17, 0.0  ;;  %v1602_v22 = vadd.f32 %v1601_v11, %v1590_v18 }
 0x587   :  { %v1604_v24 = vmax.f32 %v1602_v22, 0.0  ;;  %v1607_v27 = vadd.f32 %v1605_v20, %v1235_v19  ;;  %v1609_v13 = vadd.f32 %v1605_v20, %v2620_v41 }
 0x589   :  { %v1608_v30 = vadd.f32 %v1604_v24, %v2627_v43  ;;  %v1606_v32 = vadd.f32 %v1604_v24, %v1234_v23  ;;  %v1611_v34 = vmax.f32 %v1609_v13, 0.0 }
 0x58b   :  { %v1610_v33 = vmax.f32 %v1608_v30, 0.0 }
 0x58d   :  { %2297 = vmatprep.mubr.msk.f32.mxu0 %vm17_vm0, %v1610_v33 }
 0x58e   :  { %2298 = vmatmul.mubr.msk.f32.vlgmr.msra.gmra.mxu0 %vm17_vm0, %v1611_v34 }
 0x58f   :  { %2312 = vmatpush3.msra.mxu0 %v1801_v29  ;;  %2319 = vmatprep.mubr.msk.f32.mxu0 %vm2336_vm3, %v2334_v5 }
 0x590   :  { %2313 = vmatprep.subr.mxu0 %v2334_v5 }
 0x591   :  { %2314 = vmatpush3.msra.mxu0 %v1800_v10 }
 0x592   :  { %2315 = vmatprep.subr.mxu0 %v2334_v5 }
 0x593   :  { %2316 = vmatpush3.msra.mxu0 %v1799_v44 }
 0x594   :  { %2317 = vmatprep.subr.mxu0 %v2334_v5 }
 0x595   :  { %2318 = vmatpush3.msra.mxu0 %v1798_v31 }
 0x64e   :  { %v2299_v38 = vpop.f32.mrf.mxu0 }
 0x64f   :  { %v1699_v39 = vadd.f32 %v2299_v38, %v1620_v37 }
 0x650   :  { %v1693_v40 = vpop.f32.mrf.mxu0 }
 0x651   :  { %v1694_v41 = vadd.f32 %v1693_v40, %v1620_v37  ;;  %v1703_v43 = vmax.f32 %v1699_v39, 0.0 }
 0x653   :  { %v1702_v42 = vmax.f32 %v1694_v41, 0.0 }
 0x655   :  { %2308 = vmatprep.mubr.msk.f32.mxu1 %vm17_vm0, %v1702_v42 }
 0x656   :  { %2309 = vmatmul.mubr.msk.f32.vlgmr.msra.gmra.mxu1 %vm17_vm0, %v1703_v43 }
 0x657   :  { %2326 = vmatprep.mubr.msk.f32.mxu1 %vm2336_vm3, %v2334_v5  ;;  %2323 = vmatpush3.msra.mxu1 %v1887_v58 }
 0x658   :  { %2324 = vmatprep.subr.mxu1 %v2334_v5 }
 0x659   :  { %2325 = vmatpush3.msra.mxu1 %v1886_v59 }
 0x716   :  { %v2310_v47 = vpop.f32.mrf.mxu1 }
 0x717   :  { %v1791_v48 = vadd.f32 %v2310_v47, %v1712_v46 }
 0x718   :  { %v1785_v49 = vpop.f32.mrf.mxu1 }
 0x719   :  { %v1795_v50 = vmax.f32 %v1791_v48, 0.0  ;;  %v1786_v51 = vadd.f32 %v1785_v49, %v1712_v46 }
 0x71b   :  { %v1797_v52 = vadd.f32 %v1795_v50, %v1607_v27  ;;  %v1794_v53 = vmax.f32 %v1786_v51, 0.0 }
 0x71d   :  { %v1796_v54 = vadd.f32 %v1794_v53, %v1606_v32  ;;  %v1810_v55 = vrot.slane %v1797_v52, 6 }
 0x71f   :  { %v1809_v56 = vrot.slane %v1796_v54, 7 }
 0x721   :  { %v1812_v57 = vsel %vm1811_vm4, %v1810_v55, %v1809_v56 }
 0x722   :  { %2320 = vmatmul.mubr.msk.f32.vlgmr.msra.gmra.mxu0 %vm17_vm0, %v1812_v57 }
 0x7e2   :  { %v1881_v61 = vpop.f32.mrf.mxu0 }
 0x7e3   :  { %v1882_v62 = vadd.f32 %v2012_v60, %v1881_v61 }
 0x7e4   :  { %v2321_v63 = vpop.f32.mrf.mxu0 }
 0x7e5   :  { %v1885_v0 = vmax.f32 %v1882_v62, 0.0 }
 0x7e7   :  { %2327 = vmatmul.mubr.msk.f32.vlgmr.msra.gmra.mxu1 %vm1893_vm5, %v1885_v0 }
 0x8a7   :  { %v1963_v5 = vpop.f32.mrf.mxu1 }
 0x8a8   :  { %v1964_v2 = vadd.f32 %v2014_v1, %v1963_v5 }
 0x8a9   :  { %v2328_v3 = vpop.f32.mrf.mxu1 }
 0x8aa   :  { %1967 = vst [vmem:[%s2759_s4] sm:$0x3] %v1964_v2 }

</bundles_post_ra>
